<compile_context>
chip_gen: v6e
topology: v6e:2x2x1
jax: 0.10.0
libtpu: 0.0.40
codegen_flags: <defaults>
</compile_context>

<pallas_src>
import jax
import jax.numpy as jnp
from jax.experimental import pallas as pl
from jax.experimental.pallas import tpu as pltpu

EPS = 1e-5
LANE = 128
TILE_M_MAX = 1024                    # amortize ~0.35us/step pipeline overhead
VMEM_BUDGET = 12 * 1024 * 1024       # per-step budget; fits v5e's 16 MiB default


def _round_up(x, m):
    return (x + m - 1) // m * m


def _pick_tile_m(M, k_pad, c_pad, out_itemsize, has_res):
    """Largest 8-aligned M tile whose per-step (double-buffered) VMEM footprint
    fits VMEM_BUDGET on every generation, then split so the grid has >=2 steps
    (v7x megacore) whenever M allows it."""
    fixed = 2 * k_pad * c_pad * 2                          # bf16 weights (x2, conservative)
    per_row_p1 = 2 * (k_pad + c_pad) * 2                   # bf16 A tile + bf16 y tile
    per_row_p2 = 2 * c_pad * (2 + out_itemsize + (2 if has_res else 0))
    per_row = max(per_row_p1, per_row_p2)
    tile = (VMEM_BUDGET - fixed) // per_row
    tile = max(8, min(TILE_M_MAX, tile) // 8 * 8)
    tile = min(tile, _round_up(M, 8))
    if pl.cdiv(M, tile) < 2 and M > 8:                     # keep both TCs busy on v7x
        tile = max(8, _round_up(pl.cdiv(M, 2), 8))
    return tile


# ------------------------- Pallas kernels ------------------------- #
def _matmul_stats_kernel(a_ref, w_ref, y_ref, sum_ref, sq_ref):
    """One M-tile: y = A @ W (bf16 in, f32 acc); y stored bf16, stats in f32."""
    y = jnp.dot(a_ref[...], w_ref[...], preferred_element_type=jnp.float32)
    y_ref[...] = y.astype(y_ref.dtype)
    sum_ref[...] = jnp.sum(y, axis=0, keepdims=True)[None]      # (1, 1, Cpad)
    sq_ref[...] = jnp.sum(y * y, axis=0, keepdims=True)[None]   # (1, 1, Cpad)


def _make_bn_act_kernel(apply_relu: bool, has_residual: bool):
    """One M-tile: out = y * scale + bias (+residual) (+ReLU). f32 epilogue math."""

    def kernel(*refs):
        if has_residual:
            y_ref, scale_ref, bias_ref, res_ref, o_ref = refs
        else:
            y_ref, scale_ref, bias_ref, o_ref = refs
        out = y_ref[...].astype(jnp.float32) * scale_ref[...] + bias_ref[...]
        if has_residual:
            out = out + res_ref[...].astype(jnp.float32)
        if apply_relu:
            out = jnp.maximum(out, 0.0)
        o_ref[...] = out.astype(o_ref.dtype)

    return kernel


# ------------------------- fused conv+BN(+res)(+ReLU) wrapper ------------------------- #
def fused_conv_bn_act(a, w_mat, gamma, beta, *, relu, residual=None,
                      out_dtype=jnp.float32):
    """a: (M, K) im2col patches, w_mat: (K, Cout). Returns (M, Cout) in out_dtype.

    Conv-as-matmul + train-mode BatchNorm (+residual) (+ReLU), computed as two
    tiled Pallas passes (matmul + stats, then normalize).
    """
    M, K = a.shape
    Cout = w_mat.shape[1]
    c_pad = _round_up(Cout, LANE)          # lane-dense output channels
    k_pad = _round_up(K, LANE)             # lane-dense contraction dim
    out_itemsize = jnp.dtype(out_dtype).itemsize
    has_res = residual is not None

    tile_m = _pick_tile_m(M, k_pad, c_pad, out_itemsize, has_res)
    nt = pl.cdiv(M, tile_m)
    m_pad = nt * tile_m

    # Zero-pad operands; padded rows / K entries / channels contribute 0 to
    # matmul and to the (sum, sumsq) partials.
    a_p = jnp.pad(a.astype(jnp.bfloat16), ((0, m_pad - M), (0, k_pad - K)))
    w_p = jnp.pad(w_mat.astype(jnp.bfloat16), ((0, k_pad - K), (0, c_pad - Cout)))

    # ---- pass 1: tiled matmul + per-tile BN partial statistics ("parallel") ----
    bytes1 = (m_pad * k_pad + k_pad * c_pad + m_pad * c_pad) * 2 + 2 * nt * c_pad * 4
    y, psum, psq = pl.pallas_call(
        _matmul_stats_kernel,
        grid=(nt,),
        in_specs=[
            pl.BlockSpec((tile_m, k_pad), lambda i: (i, 0)),
            pl.BlockSpec((k_pad, c_pad), lambda i: (0, 0)),
        ],
        out_specs=[
            pl.BlockSpec((tile_m, c_pad), lambda i: (i, 0)),
            pl.BlockSpec((1, 1, c_pad), lambda i: (i, 0, 0)),
            pl.BlockSpec((1, 1, c_pad), lambda i: (i, 0, 0)),
        ],
        out_shape=[
            jax.ShapeDtypeStruct((m_pad, c_pad), jnp.bfloat16),   # bf16 intermediate
            jax.ShapeDtypeStruct((nt, 1, c_pad), jnp.float32),
            jax.ShapeDtypeStruct((nt, 1, c_pad), jnp.float32),
        ],
        compiler_params=pltpu.CompilerParams(dimension_semantics=("parallel",)),
        cost_estimate=pl.CostEstimate(flops=2 * m_pad * k_pad * c_pad,
                                      transcendentals=0, bytes_accessed=bytes1),
    )(a_p, w_p)

    # ---- glue: fold batch stats + gamma/beta into per-channel scale/bias (O(C)) ----
    # NOTE: one-pass E[x^2]-E[x]^2 in f32; adequate here (see test tolerance),
    # switch to a centered two-pass path if tighter accuracy is ever required.
    ssum = jnp.sum(psum[:, 0, :], axis=0)                    # (c_pad,)
    ssq = jnp.sum(psq[:, 0, :], axis=0)                      # (c_pad,)
    mean = ssum / M                                          # padded rows contribute 0
    var = jnp.maximum(ssq / M - mean * mean, 0.0)            # biased (train-mode) variance
    inv = jax.lax.rsqrt(var + EPS)
    g_p = jnp.pad(gamma.astype(jnp.float32), (0, c_pad - Cout))
    b_p = jnp.pad(beta.astype(jnp.float32), (0, c_pad - Cout))
    scale = (g_p * inv).reshape(1, c_pad)
    bias = (b_p - mean * g_p * inv).reshape(1, c_pad)

    # ---- pass 2: fully parallel tiled normalize (+residual) (+ReLU) ----
    in_specs = [
        pl.BlockSpec((tile_m, c_pad), lambda i: (i, 0)),
        pl.BlockSpec((1, c_pad), lambda i: (0, 0)),
        pl.BlockSpec((1, c_pad), lambda i: (0, 0)),
    ]
    args = [y, scale, bias]
    if has_res:
        res_p = jnp.pad(residual.astype(jnp.bfloat16),
                        ((0, m_pad - M), (0, c_pad - Cout)))
        in_specs.append(pl.BlockSpec((tile_m, c_pad), lambda i: (i, 0)))
        args.append(res_p)

    bytes2 = (m_pad * c_pad * (2 + out_itemsize) + 2 * c_pad * 4
              + (m_pad * c_pad * 2 if has_res else 0))
    out = pl.pallas_call(
        _make_bn_act_kernel(relu, has_res),
        grid=(nt,),
        in_specs=in_specs,
        out_specs=pl.BlockSpec((tile_m, c_pad), lambda i: (i, 0)),
        out_shape=jax.ShapeDtypeStruct((m_pad, c_pad), out_dtype),
        compiler_params=pltpu.CompilerParams(dimension_semantics=("parallel",)),
        cost_estimate=pl.CostEstimate(flops=3 * m_pad * c_pad,
                                      transcendentals=0, bytes_accessed=bytes2),
    )(*args)

    if m_pad == M and c_pad == Cout:     # avoid an extra HBM round trip when unpadded
        return out
    return out[:M, :Cout]


# ------------------------- JAX glue (im2col, layout) ------------------------- #
def im2col_nhwc(x, ksize, stride, padding):
    """x: (N, H, W, C) -> patches (N*Hout*Wout, ksize*ksize*C), Hout, Wout."""
    N, H, W, C = x.shape
    xp = jnp.pad(x, ((0, 0), (padding, padding), (padding, padding), (0, 0)))
    Hout = (H + 2 * padding - ksize) // stride + 1
    Wout = (W + 2 * padding - ksize) // stride + 1
    cols = []
    for kh in range(ksize):
        for kw in range(ksize):
            cols.append(xp[:, kh:kh + stride * Hout:stride, kw:kw + stride * Wout:stride, :])
    patches = jnp.stack(cols, axis=3)  # (N, Hout, Wout, k*k, C)
    return patches.reshape(N * Hout * Wout, ksize * ksize * C), Hout, Wout


def _w_oihw_to_mat(w_oihw):
    """PyTorch conv weight (Cout, Cin, kh, kw) -> (kh*kw*Cin, Cout) matching im2col order."""
    Cout, Cin, kh, kw = w_oihw.shape
    return jnp.transpose(w_oihw, (2, 3, 1, 0)).reshape(kh * kw * Cin, Cout)


def conv_bn_act(x_nhwc, w_oihw, gamma, beta, *, stride, padding, relu,
                residual=None, out_dtype=jnp.float32):
    N = x_nhwc.shape[0]
    Cout, _, ksize, _ = w_oihw.shape
    # im2col in bf16 (halves the patch-matrix HBM footprint); see TODO(synk) above.
    a, Hout, Wout = im2col_nhwc(x_nhwc.astype(jnp.bfloat16), ksize, stride, padding)
    out = fused_conv_bn_act(a, _w_oihw_to_mat(w_oihw), gamma, beta,
                            relu=relu, residual=residual, out_dtype=out_dtype)
    return out.reshape(N, Hout, Wout, Cout)


def basic_block_forward(x_nchw, params, stride):
    """BasicBlock.forward. x_nchw: (N, Cin, H, W) -> (N, Cout, Hout, Wout) float32."""
    x = jnp.transpose(x_nchw, (0, 2, 3, 1))  # -> NHWC (internal format)
    N, H, W, Cin = x.shape
    Cout = params["w1"].shape[0]

    # conv1 (3x3, stride) + bn1 + relu; bf16 output feeds conv2's matmul.
    out1 = conv_bn_act(x, params["w1"], params["g1"], params["b1"],
                       stride=stride, padding=1, relu=True, out_dtype=jnp.bfloat16)

    # shortcut: 1x1-stride-2 conv + bn if stride==2, identity otherwise.
    if stride == 2:
        sc = conv_bn_act(x, params["wsc"], params["gsc"], params["bsc"],
                         stride=stride, padding=0, relu=False, out_dtype=jnp.bfloat16)
        shortcut = sc.reshape(-1, Cout)
    else:
        assert Cin == Cout, "identity shortcut requires Cin == Cout (as in PyTorch BasicBlock)"
        shortcut = x.reshape(-1, Cin)

    # conv2 (3x3, stride 1) + bn2, then +shortcut, then relu (fused in pass 2).
    out2 = conv_bn_act(out1, params["w2"], params["g2"], params["b2"],
                       stride=1, padding=1, relu=True,
                       residual=shortcut, out_dtype=jnp.float32)

    return jnp.transpose(out2, (0, 3, 1, 2))  # back to NCHW at the block boundary


# ------------------------- pure-JAX f32 reference ------------------------- #
def _ref_conv(x, w, stride, padding):
    return jax.lax.conv_general_dilated(
        x, w, (stride, stride), [(padding, padding)] * 2,
        dimension_numbers=("NCHW", "OIHW", "NCHW"))


def _ref_bn(x, g, b):
    mean = x.mean(axis=(0, 2, 3), keepdims=True)
    var = ((x - mean) ** 2).mean(axis=(0, 2, 3), keepdims=True)
    xhat = (x - mean) * jax.lax.rsqrt(var + EPS)
    return xhat * g.reshape(1, -1, 1, 1) + b.reshape(1, -1, 1, 1)


def basic_block_reference(x, params, stride):
    out = _ref_bn(_ref_conv(x, params["w1"], stride, 1), params["g1"], params["b1"])
    out = jnp.maximum(out, 0.0)
    out = _ref_bn(_ref_conv(out, params["w2"], 1, 1), params["g2"], params["b2"])
    if stride == 2:
        sc = _ref_bn(_ref_conv(x, params["wsc"], stride, 0), params["gsc"], params["bsc"])
    else:
        sc = x
    return jnp.maximum(out + sc, 0.0)


# ------------------------- main ------------------------- #
if __name__ == "__main__":
    key = jax.random.PRNGKey(0)
    in_ch, out_ch, stride = 4, 8, 2      # stride=2 exercises the conv-bn shortcut
    N, H, W = 2, 16, 16

    k0, k1, k2, k3 = jax.random.split(key, 4)
    x = jax.random.normal(k0, (N, in_ch, H, W), dtype=jnp.float32)

    params = {
        "w1": 0.1 * jax.random.normal(k1, (out_ch, in_ch, 3, 3), dtype=jnp.float32),
        "g1": jnp.ones((out_ch,), jnp.float32), "b1": jnp.zeros((out_ch,), jnp.float32),
        "w2": 0.1 * jax.random.normal(k2, (out_ch, out_ch, 3, 3), dtype=jnp.float32),
        "g2": jnp.ones((out_ch,), jnp.float32), "b2": jnp.zeros((out_ch,), jnp.float32),
        "wsc": 0.1 * jax.random.normal(k3, (out_ch, in_ch, 1, 1), dtype=jnp.float32),
        "gsc": jnp.ones((out_ch,), jnp.float32), "bsc": jnp.zeros((out_ch,), jnp.float32),
    }

    fwd = jax.jit(lambda xx, pp: basic_block_forward(xx, pp, stride))
    out = jax.block_until_ready(fwd(x, params))

    ref = jax.block_until_ready(basic_block_reference(x, params, stride))
    assert out.shape == (N, out_ch, H // stride, W // stride), out.shape
    max_err = float(jnp.abs(out - ref).max())
    # Tolerance accounts for bf16 MXU operands / bf16 intermediate activations
    # (precision contract: bf16 storage, f32 accumulation and BN math).
    assert jnp.allclose(out, ref, rtol=3e-2, atol=3e-2), max_err

    print("KERNEL_OK")
</pallas_src>

<mosaic_0001>
module attributes {stable_mosaic.version = 11 : i64} {
  func.func @_matmul_stats_kernel(%arg0: i32, %arg1: memref<64x128xbf16, #tpu.memory_space<vmem>>, %arg2: memref<128x128xbf16, #tpu.memory_space<vmem>>, %arg3: memref<64x128xbf16, #tpu.memory_space<vmem>>, %arg4: memref<1x1x128xf32, #tpu.memory_space<vmem>>, %arg5: memref<1x1x128xf32, #tpu.memory_space<vmem>>) attributes {dimension_semantics = [#tpu.dimension_semantics<parallel>], iteration_bounds = array<i64: 2>, scalar_prefetch = 0 : i64, scratch_operands = 0 : i64, tpu.core_type = #tpu.core_type<tc>, window_params = [{transform_indices = @transform_0, window_bounds = array<i64: 64, 128>}, {pipeline_mode = #tpu.pipeline_mode<synchronous>, transform_indices = @transform_1, window_bounds = array<i64: 128, 128>}, {transform_indices = @transform_2, window_bounds = array<i64: 64, 128>}, {transform_indices = @transform_3, window_bounds = array<i64: 1, 1, 128>}, {transform_indices = @transform_4, window_bounds = array<i64: 1, 1, 128>}]} {
    %c0 = arith.constant 0 : index
    %c0_0 = arith.constant 0 : index
    %0 = vector.load %arg1[%c0, %c0_0] : memref<64x128xbf16, #tpu.memory_space<vmem>>, vector<64x128xbf16>
    %c0_1 = arith.constant 0 : index
    %c0_2 = arith.constant 0 : index
    %1 = vector.load %arg2[%c0_1, %c0_2] : memref<128x128xbf16, #tpu.memory_space<vmem>>, vector<128x128xbf16>
    %cst = arith.constant dense<0.000000e+00> : vector<64x128xf32>
    %2 = tpu.matmul %0, %1, %cst {dimension_numbers = #tpu.dot_dimension_numbers<[1], [0], [0], [1], [0, 0, 1, 1], [], []>} : vector<64x128xbf16>, vector<128x128xbf16>, vector<64x128xf32> -> vector<64x128xf32>
    %3 = arith.truncf %2 : vector<64x128xf32> to vector<64x128xbf16>
    %c0_3 = arith.constant 0 : index
    %c0_4 = arith.constant 0 : index
    %4 = vector.load %arg3[%c0_3, %c0_4] : memref<64x128xbf16, #tpu.memory_space<vmem>>, vector<64x128xbf16>
    tpu.vector_store %arg3[%c0_3, %c0_4], %3 {strides = array<i32>} : memref<64x128xbf16, #tpu.memory_space<vmem>>, vector<64x128xbf16>,
    %cst_5 = arith.constant dense<0.000000e+00> : vector<128xf32>
    %5 = vector.multi_reduction <add>, %2, %cst_5 [0] : vector<64x128xf32> to vector<128xf32>
    %6 = vector.shape_cast %5 : vector<128xf32> to vector<1x128xf32>
    %7 = vector.shape_cast %6 : vector<1x128xf32> to vector<1x1x128xf32>
    %c0_6 = arith.constant 0 : index
    %c0_7 = arith.constant 0 : index
    %c0_8 = arith.constant 0 : index
    %8 = vector.load %arg4[%c0_6, %c0_7, %c0_8] : memref<1x1x128xf32, #tpu.memory_space<vmem>>, vector<1x1x128xf32>
    tpu.vector_store %arg4[%c0_6, %c0_7, %c0_8], %7 {strides = array<i32>} : memref<1x1x128xf32, #tpu.memory_space<vmem>>, vector<1x1x128xf32>,
    %9 = arith.mulf %2, %2 : vector<64x128xf32>
    %cst_9 = arith.constant dense<0.000000e+00> : vector<128xf32>
    %10 = vector.multi_reduction <add>, %9, %cst_9 [0] : vector<64x128xf32> to vector<128xf32>
    %11 = vector.shape_cast %10 : vector<128xf32> to vector<1x128xf32>
    %12 = vector.shape_cast %11 : vector<1x128xf32> to vector<1x1x128xf32>
    %c0_10 = arith.constant 0 : index
    %c0_11 = arith.constant 0 : index
    %c0_12 = arith.constant 0 : index
    %13 = vector.load %arg5[%c0_10, %c0_11, %c0_12] : memref<1x1x128xf32, #tpu.memory_space<vmem>>, vector<1x1x128xf32>
    tpu.vector_store %arg5[%c0_10, %c0_11, %c0_12], %12 {strides = array<i32>} : memref<1x1x128xf32, #tpu.memory_space<vmem>>, vector<1x1x128xf32>,
    return
  }
  func.func @transform_0(%arg0: i32) -> (i32, i32) {
    %c0_i32 = arith.constant 0 : i32
    %c0_i32_0 = arith.constant 0 : i32
    return %arg0, %c0_i32 : i32, i32
  }
  func.func @transform_1(%arg0: i32) -> (i32, i32) {
    %c0_i32 = arith.constant 0 : i32
    %c0_i32_0 = arith.constant 0 : i32
    %c0_i32_1 = arith.constant 0 : i32
    return %c0_i32, %c0_i32_0 : i32, i32
  }
  func.func @transform_2(%arg0: i32) -> (i32, i32) {
    %c0_i32 = arith.constant 0 : i32
    %c0_i32_0 = arith.constant 0 : i32
    return %arg0, %c0_i32 : i32, i32
  }
  func.func @transform_3(%arg0: i32) -> (i32, i32, i32) {
    %c0_i32 = arith.constant 0 : i32
    %c0_i32_0 = arith.constant 0 : i32
    %c0_i32_1 = arith.constant 0 : i32
    return %arg0, %c0_i32, %c0_i32_0 : i32, i32, i32
  }
  func.func @transform_4(%arg0: i32) -> (i32, i32, i32) {
    %c0_i32 = arith.constant 0 : i32
    %c0_i32_0 = arith.constant 0 : i32
    %c0_i32_1 = arith.constant 0 : i32
    return %arg0, %c0_i32, %c0_i32_0 : i32, i32, i32
  }
}

module attributes {stable_mosaic.version = 11 : i64} {
  func.func @kernel(%arg0: i32, %arg1: memref<64x128xbf16, #tpu.memory_space<vmem>>, %arg2: memref<1x128xf32, #tpu.memory_space<vmem>>, %arg3: memref<1x128xf32, #tpu.memory_space<vmem>>, %arg4: memref<64x128xbf16, #tpu.memory_space<vmem>>) attributes {dimension_semantics = [#tpu.dimension_semantics<parallel>], iteration_bounds = array<i64: 2>, scalar_prefetch = 0 : i64, scratch_operands = 0 : i64, tpu.core_type = #tpu.core_type<tc>, window_params = [{transform_indices = @transform_0, window_bounds = array<i64: 64, 128>}, {pipeline_mode = #tpu.pipeline_mode<synchronous>, transform_indices = @transform_1, window_bounds = array<i64: 1, 128>}, {pipeline_mode = #tpu.pipeline_mode<synchronous>, transform_indices = @transform_2, window_bounds = array<i64: 1, 128>}, {transform_indices = @transform_3, window_bounds = array<i64: 64, 128>}]} {
    %c0 = arith.constant 0 : index
    %c0_0 = arith.constant 0 : index
    %0 = vector.load %arg1[%c0, %c0_0] : memref<64x128xbf16, #tpu.memory_space<vmem>>, vector<64x128xbf16>
    %1 = arith.extf %0 : vector<64x128xbf16> to vector<64x128xf32>
    %c0_1 = arith.constant 0 : index
    %c0_2 = arith.constant 0 : index
    %2 = vector.load %arg2[%c0_1, %c0_2] : memref<1x128xf32, #tpu.memory_space<vmem>>, vector<1x128xf32>
    %3 = vector.broadcast %2 : vector<1x128xf32> to vector<64x128xf32>
    %4 = arith.mulf %1, %3 : vector<64x128xf32>
    %c0_3 = arith.constant 0 : index
    %c0_4 = arith.constant 0 : index
    %5 = vector.load %arg3[%c0_3, %c0_4] : memref<1x128xf32, #tpu.memory_space<vmem>>, vector<1x128xf32>
    %6 = vector.broadcast %5 : vector<1x128xf32> to vector<64x128xf32>
    %7 = arith.addf %4, %6 : vector<64x128xf32>
    %cst = arith.constant 0.000000e+00 : f32
    %8 = vector.broadcast %cst : f32 to vector<64x128xf32>
    %9 = arith.maximumf %7, %8 : vector<64x128xf32>
    %10 = arith.truncf %9 : vector<64x128xf32> to vector<64x128xbf16>
    %c0_5 = arith.constant 0 : index
    %c0_6 = arith.constant 0 : index
    %11 = vector.load %arg4[%c0_5, %c0_6] : memref<64x128xbf16, #tpu.memory_space<vmem>>, vector<64x128xbf16>
    tpu.vector_store %arg4[%c0_5, %c0_6], %10 {strides = array<i32>} : memref<64x128xbf16, #tpu.memory_space<vmem>>, vector<64x128xbf16>,
    return
  }
  func.func @transform_0(%arg0: i32) -> (i32, i32) {
    %c0_i32 = arith.constant 0 : i32
    %c0_i32_0 = arith.constant 0 : i32
    return %arg0, %c0_i32 : i32, i32
  }
  func.func @transform_1(%arg0: i32) -> (i32, i32) {
    %c0_i32 = arith.constant 0 : i32
    %c0_i32_0 = arith.constant 0 : i32
    %c0_i32_1 = arith.constant 0 : i32
    return %c0_i32, %c0_i32_0 : i32, i32
  }
  func.func @transform_2(%arg0: i32) -> (i32, i32) {
    %c0_i32 = arith.constant 0 : i32
    %c0_i32_0 = arith.constant 0 : i32
    %c0_i32_1 = arith.constant 0 : i32
    return %c0_i32, %c0_i32_0 : i32, i32
  }
  func.func @transform_3(%arg0: i32) -> (i32, i32) {
    %c0_i32 = arith.constant 0 : i32
    %c0_i32_0 = arith.constant 0 : i32
    return %arg0, %c0_i32 : i32, i32
  }
}

module attributes {stable_mosaic.version = 11 : i64} {
  func.func @kernel(%arg0: i32, %arg1: memref<64x128xbf16, #tpu.memory_space<vmem>>, %arg2: memref<1x128xf32, #tpu.memory_space<vmem>>, %arg3: memref<1x128xf32, #tpu.memory_space<vmem>>, %arg4: memref<64x128xbf16, #tpu.memory_space<vmem>>) attributes {dimension_semantics = [#tpu.dimension_semantics<parallel>], iteration_bounds = array<i64: 2>, scalar_prefetch = 0 : i64, scratch_operands = 0 : i64, tpu.core_type = #tpu.core_type<tc>, window_params = [{transform_indices = @transform_0, window_bounds = array<i64: 64, 128>}, {pipeline_mode = #tpu.pipeline_mode<synchronous>, transform_indices = @transform_1, window_bounds = array<i64: 1, 128>}, {pipeline_mode = #tpu.pipeline_mode<synchronous>, transform_indices = @transform_2, window_bounds = array<i64: 1, 128>}, {transform_indices = @transform_3, window_bounds = array<i64: 64, 128>}]} {
    %c0 = arith.constant 0 : index
    %c0_0 = arith.constant 0 : index
    %0 = vector.load %arg1[%c0, %c0_0] : memref<64x128xbf16, #tpu.memory_space<vmem>>, vector<64x128xbf16>
    %1 = arith.extf %0 : vector<64x128xbf16> to vector<64x128xf32>
    %c0_1 = arith.constant 0 : index
    %c0_2 = arith.constant 0 : index
    %2 = vector.load %arg2[%c0_1, %c0_2] : memref<1x128xf32, #tpu.memory_space<vmem>>, vector<1x128xf32>
    %3 = vector.broadcast %2 : vector<1x128xf32> to vector<64x128xf32>
    %4 = arith.mulf %1, %3 : vector<64x128xf32>
    %c0_3 = arith.constant 0 : index
    %c0_4 = arith.constant 0 : index
    %5 = vector.load %arg3[%c0_3, %c0_4] : memref<1x128xf32, #tpu.memory_space<vmem>>, vector<1x128xf32>
    %6 = vector.broadcast %5 : vector<1x128xf32> to vector<64x128xf32>
    %7 = arith.addf %4, %6 : vector<64x128xf32>
    %8 = arith.truncf %7 : vector<64x128xf32> to vector<64x128xbf16>
    %c0_5 = arith.constant 0 : index
    %c0_6 = arith.constant 0 : index
    %9 = vector.load %arg4[%c0_5, %c0_6] : memref<64x128xbf16, #tpu.memory_space<vmem>>, vector<64x128xbf16>
    tpu.vector_store %arg4[%c0_5, %c0_6], %8 {strides = array<i32>} : memref<64x128xbf16, #tpu.memory_space<vmem>>, vector<64x128xbf16>,
    return
  }
  func.func @transform_0(%arg0: i32) -> (i32, i32) {
    %c0_i32 = arith.constant 0 : i32
    %c0_i32_0 = arith.constant 0 : i32
    return %arg0, %c0_i32 : i32, i32
  }
  func.func @transform_1(%arg0: i32) -> (i32, i32) {
    %c0_i32 = arith.constant 0 : i32
    %c0_i32_0 = arith.constant 0 : i32
    %c0_i32_1 = arith.constant 0 : i32
    return %c0_i32, %c0_i32_0 : i32, i32
  }
  func.func @transform_2(%arg0: i32) -> (i32, i32) {
    %c0_i32 = arith.constant 0 : i32
    %c0_i32_0 = arith.constant 0 : i32
    %c0_i32_1 = arith.constant 0 : i32
    return %c0_i32, %c0_i32_0 : i32, i32
  }
  func.func @transform_3(%arg0: i32) -> (i32, i32) {
    %c0_i32 = arith.constant 0 : i32
    %c0_i32_0 = arith.constant 0 : i32
    return %arg0, %c0_i32 : i32, i32
  }
}

module attributes {stable_mosaic.version = 11 : i64} {
  func.func @kernel(%arg0: i32, %arg1: memref<64x128xbf16, #tpu.memory_space<vmem>>, %arg2: memref<1x128xf32, #tpu.memory_space<vmem>>, %arg3: memref<1x128xf32, #tpu.memory_space<vmem>>, %arg4: memref<64x128xbf16, #tpu.memory_space<vmem>>, %arg5: memref<64x128xf32, #tpu.memory_space<vmem>>) attributes {dimension_semantics = [#tpu.dimension_semantics<parallel>], iteration_bounds = array<i64: 2>, scalar_prefetch = 0 : i64, scratch_operands = 0 : i64, tpu.core_type = #tpu.core_type<tc>, window_params = [{transform_indices = @transform_0, window_bounds = array<i64: 64, 128>}, {pipeline_mode = #tpu.pipeline_mode<synchronous>, transform_indices = @transform_1, window_bounds = array<i64: 1, 128>}, {pipeline_mode = #tpu.pipeline_mode<synchronous>, transform_indices = @transform_2, window_bounds = array<i64: 1, 128>}, {transform_indices = @transform_3, window_bounds = array<i64: 64, 128>}, {transform_indices = @transform_4, window_bounds = array<i64: 64, 128>}]} {
    %c0 = arith.constant 0 : index
    %c0_0 = arith.constant 0 : index
    %0 = vector.load %arg1[%c0, %c0_0] : memref<64x128xbf16, #tpu.memory_space<vmem>>, vector<64x128xbf16>
    %1 = arith.extf %0 : vector<64x128xbf16> to vector<64x128xf32>
    %c0_1 = arith.constant 0 : index
    %c0_2 = arith.constant 0 : index
    %2 = vector.load %arg2[%c0_1, %c0_2] : memref<1x128xf32, #tpu.memory_space<vmem>>, vector<1x128xf32>
    %3 = vector.broadcast %2 : vector<1x128xf32> to vector<64x128xf32>
    %4 = arith.mulf %1, %3 : vector<64x128xf32>
    %c0_3 = arith.constant 0 : index
    %c0_4 = arith.constant 0 : index
    %5 = vector.load %arg3[%c0_3, %c0_4] : memref<1x128xf32, #tpu.memory_space<vmem>>, vector<1x128xf32>
    %6 = vector.broadcast %5 : vector<1x128xf32> to vector<64x128xf32>
    %7 = arith.addf %4, %6 : vector<64x128xf32>
    %c0_5 = arith.constant 0 : index
    %c0_6 = arith.constant 0 : index
    %8 = vector.load %arg4[%c0_5, %c0_6] : memref<64x128xbf16, #tpu.memory_space<vmem>>, vector<64x128xbf16>
    %9 = arith.extf %8 : vector<64x128xbf16> to vector<64x128xf32>
    %10 = arith.addf %7, %9 : vector<64x128xf32>
    %cst = arith.constant 0.000000e+00 : f32
    %11 = vector.broadcast %cst : f32 to vector<64x128xf32>
    %12 = arith.maximumf %10, %11 : vector<64x128xf32>
    %c0_7 = arith.constant 0 : index
    %c0_8 = arith.constant 0 : index
    %13 = vector.load %arg5[%c0_7, %c0_8] : memref<64x128xf32, #tpu.memory_space<vmem>>, vector<64x128xf32>
    tpu.vector_store %arg5[%c0_7, %c0_8], %12 {strides = array<i32>} : memref<64x128xf32, #tpu.memory_space<vmem>>, vector<64x128xf32>,
    return
  }
  func.func @transform_0(%arg0: i32) -> (i32, i32) {
    %c0_i32 = arith.constant 0 : i32
    %c0_i32_0 = arith.constant 0 : i32
    return %arg0, %c0_i32 : i32, i32
  }
  func.func @transform_1(%arg0: i32) -> (i32, i32) {
    %c0_i32 = arith.constant 0 : i32
    %c0_i32_0 = arith.constant 0 : i32
    %c0_i32_1 = arith.constant 0 : i32
    return %c0_i32, %c0_i32_0 : i32, i32
  }
  func.func @transform_2(%arg0: i32) -> (i32, i32) {
    %c0_i32 = arith.constant 0 : i32
    %c0_i32_0 = arith.constant 0 : i32
    %c0_i32_1 = arith.constant 0 : i32
    return %c0_i32, %c0_i32_0 : i32, i32
  }
  func.func @transform_3(%arg0: i32) -> (i32, i32) {
    %c0_i32 = arith.constant 0 : i32
    %c0_i32_0 = arith.constant 0 : i32
    return %arg0, %c0_i32 : i32, i32
  }
  func.func @transform_4(%arg0: i32) -> (i32, i32) {
    %c0_i32 = arith.constant 0 : i32
    %c0_i32_0 = arith.constant 0 : i32
    return %arg0, %c0_i32 : i32, i32
  }
}

</mosaic_0001>

<bundles_post_ra>
// kernel: _lambda_.6
= control target key start
LH: loop header
LB: loop body
LE: loop exit
PB: predicated region body
PF: predicated region fallthrough
CT: control target
= control target key end

     0   :  { %s729_s15 = smov 0   ;;  %s794_s0 = inlined_call_operand.vmem [shape: bf16[128,128], index: 0, kind: input, shape index: {}]   ;;  %s795_s1 = inlined_call_operand.vmem [shape: bf16[128,128], index: 1, kind: input, shape index: {}]   ;;  %s796_s2 = inlined_call_operand.vmem [shape: bf16[128,128], index: 2, kind: output, shape index: {0}]   ;;  %s797_s3 = inlined_call_operand.vmem [shape: f32[2,1,128], index: 3, kind: output, shape index: {1}]   ;;  %s798_s4 = inlined_call_operand.vmem [shape: f32[2,1,128], index: 4, kind: output, shape index: {2}]  }
   0x1 LB: > { %s735_s16 = sadd.s32 4294967295, %s702_s15   ;;  %p566_p0 = scmp.ge.s32.totalorder %s702_s15, 1  ;;  %s702_s15 = sphi %s729_s15, %s15_s15  }
   0x2   : > { %p168_p1 = scmp.lt.s32.totalorder %s702_s15, 3 }
   0x4   : > { %p169_p2 = pnand %p566_p0, %p168_p1 }
   0x5   : > { %s567_s19 = sshll.u32 (!%p169_p2), %s735_s16, 3  ;;  %p212_p4 = scmp.lt.s32.totalorder (!%p169_p2), %s735_s16, 1 }
   0x6   : > { %172 = sbr.rel (%p169_p2) target bundleno = 272 (0x110), region = 28  ;;  %p201_p3 = scmp.lt.s32.totalorder (!%p169_p2), %s567_s19, 15 }
   0xb   : > { %v684_v0 = vld [vmem:[%s795_s1 + $0x38] sm:$0xff]   ;;  %v685_v1 = vld [vmem:[%s795_s1 + $0x30] sm:$0xff]   ;;  %s800_s19 = smov (!%p201_p3, %s567_s19), 15  ;;  %v686_v2 = vld [vmem:[%s795_s1 + $0x28] sm:$0xff]   ;;  %s802_s16 = smov (!%p212_p4, %s735_s16), 1 }
   0xc   : > { %636 = vmatprep.subr.bf16.mxu0 %v684_v0  ;;  %660 = vmatprep.subr.bf16.mxu1 %v684_v0  ;;  %s568_s24 = sshll.u32 %s800_s19, 2  ;;  %v687_v3 = vld [vmem:[%s795_s1 + $0x20] sm:$0xff]   ;;  %v688_v6 = vld [vmem:[%s795_s1 + $0x18] sm:$0xff]   ;;  %v689_v7 = vld [vmem:[%s795_s1 + $0x10] sm:$0xff]   ;;  %s214_s19 = scalar_lea.vmem %s797_s3, %s802_s16 }
   0xd   : > { %637 = vmatpush3.bf16.msra.mxu0 %v684_v0  ;;  %668 = vmatpush3.bf16.msra.mxu1 %v684_v0  ;;  %s757_s27 = scalar_lea.vmem %s794_s0, %s568_s24  ;;  %v690_v8 = vld [vmem:[%s795_s1 + $0x8] sm:$0xff]   ;;  %v691_v9 = vld [vmem:[%s795_s1] sm:$0xff]   ;;  %s210_s14 = scalar_lea.vmem %s796_s2, %s568_s24 }
   0xe   : > { %638 = vmatprep.subr.bf16.mxu0 %v685_v1  ;;  %661 = vmatprep.subr.bf16.mxu1 %v685_v1  ;;  %v692_v4 = vld [vmem:[%s757_s27] sm:$0xff]   ;;  %v694_v5 = vld [vmem:[%s757_s27 + $0x10] sm:$0xff]   ;;  %v693_v10 = vld [vmem:[%s757_s27 + $0x8] sm:$0xff]   ;;  %s217_s22 = scalar_lea.vmem %s798_s4, %s802_s16 }
   0xf   : > { %652 = vmatprep.mubr.bf16.mxu0 %v692_v4  ;;  %656 = vmatprep.mubr.bf16.mxu1 %v694_v5  ;;  %v695_v11 = vld [vmem:[%s757_s27 + $0x18] sm:$0xff]  }
  0x11   : > { %639 = vmatpush3.bf16.msra.mxu0 %v685_v1  ;;  %669 = vmatpush3.bf16.msra.mxu1 %v685_v1 }
  0x12   : > { %640 = vmatprep.subr.bf16.mxu0 %v686_v2  ;;  %662 = vmatprep.subr.bf16.mxu1 %v686_v2 }
  0x15   : > { %641 = vmatpush3.bf16.msra.mxu0 %v686_v2  ;;  %670 = vmatpush3.bf16.msra.mxu1 %v686_v2 }
  0x16   : > { %642 = vmatprep.subr.bf16.mxu0 %v687_v3  ;;  %663 = vmatprep.subr.bf16.mxu1 %v687_v3 }
  0x19   : > { %643 = vmatpush3.bf16.msra.mxu0 %v687_v3  ;;  %671 = vmatpush3.bf16.msra.mxu1 %v687_v3 }
  0x1a   : > { %644 = vmatprep.subr.bf16.mxu0 %v688_v6  ;;  %664 = vmatprep.subr.bf16.mxu1 %v688_v6 }
  0x1d   : > { %645 = vmatpush3.bf16.msra.mxu0 %v688_v6  ;;  %672 = vmatpush3.bf16.msra.mxu1 %v688_v6 }
  0x1e   : > { %646 = vmatprep.subr.bf16.mxu0 %v689_v7  ;;  %665 = vmatprep.subr.bf16.mxu1 %v689_v7 }
  0x21   : > { %647 = vmatpush3.bf16.msra.mxu0 %v689_v7  ;;  %673 = vmatpush3.bf16.msra.mxu1 %v689_v7 }
  0x22   : > { %648 = vmatprep.subr.bf16.mxu0 %v690_v8  ;;  %666 = vmatprep.subr.bf16.mxu1 %v690_v8 }
  0x25   : > { %649 = vmatpush3.bf16.msra.mxu0 %v690_v8  ;;  %674 = vmatpush3.bf16.msra.mxu1 %v690_v8 }
  0x26   : > { %650 = vmatprep.subr.bf16.mxu0 %v691_v9  ;;  %667 = vmatprep.subr.bf16.mxu1 %v691_v9 }
  0x29   : > { %651 = vmatpush3.bf16.msra.mxu0 %v691_v9  ;;  %675 = vmatpush3.bf16.msra.mxu1 %v691_v9 }
  0x2c   : > { %653 = vmatmul.mubr.bf16.vlgmr.msra.gmra.mxu0 %v693_v10  ;;  %657 = vmatmul.mubr.bf16.vlgmr.msra.gmra.mxu1 %v695_v11 }
  0xec   : > { %v654_v12 = vpop.f32.mrf.mxu0  ;;  %v658_v13 = vpop.f32.mrf.mxu1 }
  0xed   : > { %v436_v27 = vmul.f32 %v654_v12, %v654_v12  ;;  %v440_v39 = vmul.f32 %v658_v13, %v658_v13 }
  0xee   : > { %v349_v14 = vpop.f32.mrf.mxu0  ;;  %v365_v15 = vpop.f32.mrf.mxu1 }
  0xef   : > { %v434_v20 = vmul.f32 %v349_v14, %v349_v14  ;;  %v438_v33 = vmul.f32 %v365_v15, %v365_v15 }
  0xf0   : > { %v655_v16 = vpop.f32.mrf.mxu0  ;;  %v659_v17 = vpop.f32.mrf.mxu1 }
  0xf1   : > { %v609_v18 = vpack.c.bf16 %v655_v16, %v654_v12  ;;  %v619_v19 = vpack.c.bf16 %v659_v17, %v658_v13  ;;  %v437_v30 = vmul.f32 %v655_v16, %v655_v16  ;;  %v441_v42 = vmul.f32 %v659_v17, %v659_v17 }
  0xf2   : > { %v352_v21 = vpop.f32.mrf.mxu0  ;;  %v368_v22 = vpop.f32.mrf.mxu1 }
  0xf3   : > { %621 = vst [vmem:[%s210_s14 + $0x8] sm:$0xff] %v609_v18   ;;  %v604_v23 = vpack.c.bf16 %v352_v21, %v349_v14  ;;  %v420_v24 = vadd.f32 %v352_v21, %v349_v14  ;;  %v435_v25 = vmul.f32 %v352_v21, %v352_v21  ;;  %623 = vst [vmem:[%s210_s14 + $0x18] sm:$0xff] %v619_v19  }
  0xf4   : > { %v614_v26 = vpack.c.bf16 %v368_v22, %v365_v15  ;;  %v439_v37 = vmul.f32 %v368_v22, %v368_v22 }
  0xf5   : > { %605 = vst [vmem:[%s210_s14] sm:$0xff] %v604_v23   ;;  %v421_v28 = vadd.f32 %v654_v12, %v420_v24  ;;  %v442_v29 = vadd.f32 %v435_v25, %v434_v20 }
  0xf6   : > { %622 = vst [vmem:[%s210_s14 + $0x10] sm:$0xff] %v614_v26  }
  0xf7   : > { %v443_v31 = vadd.f32 %v442_v29, %v436_v27  ;;  %v422_v32 = vadd.f32 %v655_v16, %v421_v28 }
  0xf9   : > { %v423_v34 = vadd.f32 %v422_v32, %v365_v15  ;;  %v444_v35 = vadd.f32 %v443_v31, %v437_v30 }
  0xfb   : > { %v424_v36 = vadd.f32 %v423_v34, %v368_v22  ;;  %v445_v38 = vadd.f32 %v444_v35, %v438_v33 }
  0xfd   : > { %v425_v40 = vadd.f32 %v658_v13, %v424_v36  ;;  %v446_v41 = vadd.f32 %v445_v38, %v439_v37 }
  0xff   : > { %v426_v43 = vadd.f32 %v659_v17, %v425_v40  ;;  %v447_v44 = vadd.f32 %v446_v41, %v440_v39 }
 0x101   : > { %v427_v45 = vrot.slane %v426_v43, 4  ;;  %v448_v46 = vadd.f32 %v447_v44, %v441_v42 }
 0x103   : > { %v428_v47 = vadd.f32 %v427_v45, %v426_v43  ;;  %v449_v48 = vrot.slane %v448_v46, 4 }
 0x105   : > { %v429_v49 = vrot.slane %v428_v47, 2  ;;  %v450_v50 = vadd.f32 %v449_v48, %v448_v46 }
 0x107   : > { %v430_v51 = vadd.f32 %v429_v49, %v428_v47  ;;  %v451_v52 = vrot.slane %v450_v50, 2 }
 0x109   : > { %v431_v53 = vrot.slane %v430_v51, 1  ;;  %v452_v54 = vadd.f32 %v451_v52, %v450_v50 }
 0x10b   : > { %v432_v55 = vadd.f32 %v431_v53, %v430_v51  ;;  %v453_v56 = vrot.slane %v452_v54, 1 }
 0x10d   : > { %433 = vst [vmem:[%s214_s19] sm:$0x1] %v432_v55  ;;  %v454_v57 = vadd.f32 %v453_v56, %v452_v54 }
 0x10f   : > { %455 = vst [vmem:[%s217_s22] sm:$0x1] %v454_v57 }
 0x110 PF: > { %s15_s15 = sadd.s32 1, %s702_s15  }
 0x111   : > { %p12_p5 = scmp.ge.s32.totalorder %s15_s15, 4  }
 0x113   :  { %14 = sbr.rel (!%p12_p5) target bundleno = 1 (0x1), region = 82 }

// kernel: _lambda_.7
= control target key start
LH: loop header
LB: loop body
LE: loop exit
PB: predicated region body
PF: predicated region fallthrough
CT: control target
= control target key end

     0   :  { %s431_s12 = smov 0   ;;  %s461_s0 = inlined_call_operand.vmem [shape: bf16[128,128], index: 0, kind: input, shape index: {}]   ;;  %s462_s1 = inlined_call_operand.vmem [shape: f32[1,128], index: 1, kind: input, shape index: {}]   ;;  %s463_s2 = inlined_call_operand.vmem [shape: f32[1,128], index: 2, kind: input, shape index: {}]   ;;  %s464_s3 = inlined_call_operand.vmem [shape: bf16[128,128], index: 3, kind: output, shape index: {}]  }
   0x1 LB: > { %s324_s13 = sadd.s32 4294967295, %s409_s12   ;;  %p328_p0 = scmp.ge.s32.totalorder %s409_s12, 1  ;;  %s409_s12 = sphi %s431_s12, %s13_s12  }
   0x2   : > { %p138_p1 = scmp.lt.s32.totalorder %s409_s12, 3 }
   0x4   : > { %p139_p2 = pnand %p328_p0, %p138_p1 }
   0x5   : > { %s329_s14 = sshll.u32 (!%p139_p2), %s324_s13, 3 }
   0x6   : > { %142 = sbr.rel (%p139_p2) target bundleno = 27 (0x1b), region = 32  ;;  %p163_p3 = scmp.lt.s32.totalorder (!%p139_p2), %s329_s14, 15 }
   0xb   : > { %s466_s14 = smov (!%p163_p3, %s329_s14), 15  ;;  %v333_v0 = vld [vmem:[%s462_s1] ss:$0 sm:$0xff] }
   0xc   : > { %s330_s15 = sshll.u32 %s466_s14, 2  ;;  %v334_v9 = vld [vmem:[%s463_s2] ss:$0 sm:$0xff] }
   0xd   : > { %s166_s18 = scalar_lea.vmem %s461_s0, %s330_s15  ;;  %s172_s25 = scalar_lea.vmem %s464_s3, %s330_s15 }
   0xe   : > { %v354_v1 = vld [vmem:[%s166_s18] sm:$0xff]   ;;  %v389_v2 = vld [vmem:[%s166_s18 + $0x8] sm:$0xff]   ;;  %v390_v3 = vld [vmem:[%s166_s18 + $0x10] sm:$0xff]  }
   0xf   : > { %v355_v4 = vunpack.c.l.bf16 %v354_v1  ;;  %v356_v5 = vunpack.c.h.bf16 %v354_v1  ;;  %v359_v6 = vunpack.c.l.bf16 %v389_v2  ;;  %v360_v7 = vunpack.c.h.bf16 %v389_v2  ;;  %v391_v8 = vld [vmem:[%s166_s18 + $0x18] sm:$0xff]  }
  0x10   : > { %v363_v10 = vunpack.c.l.bf16 %v390_v3  ;;  %v364_v11 = vunpack.c.h.bf16 %v390_v3  ;;  %v367_v12 = vunpack.c.l.bf16 %v391_v8  ;;  %v368_v13 = vunpack.c.h.bf16 %v391_v8 }
  0x11   : > { %v197_v14 = vmul.f32 %v355_v4, %v333_v0  ;;  %v198_v15 = vmul.f32 %v356_v5, %v333_v0  ;;  %v199_v16 = vmul.f32 %v359_v6, %v333_v0  ;;  %v200_v17 = vmul.f32 %v360_v7, %v333_v0 }
  0x12   : > { %v201_v18 = vmul.f32 %v363_v10, %v333_v0  ;;  %v202_v19 = vmul.f32 %v364_v11, %v333_v0  ;;  %v203_v20 = vmul.f32 %v367_v12, %v333_v0  ;;  %v204_v21 = vmul.f32 %v368_v13, %v333_v0 }
  0x13   : > { %v212_v22 = vadd.f32 %v334_v9, %v197_v14  ;;  %v213_v23 = vadd.f32 %v334_v9, %v198_v15  ;;  %v214_v24 = vadd.f32 %v334_v9, %v199_v16  ;;  %v215_v25 = vadd.f32 %v334_v9, %v200_v17 }
  0x14   : > { %v216_v26 = vadd.f32 %v334_v9, %v201_v18  ;;  %v217_v27 = vadd.f32 %v334_v9, %v202_v19  ;;  %v218_v28 = vadd.f32 %v334_v9, %v203_v20  ;;  %v219_v29 = vadd.f32 %v334_v9, %v204_v21 }
  0x15   : > { %v220_v30 = vmax.f32 %v212_v22, 0.0  ;;  %v221_v31 = vmax.f32 %v213_v23, 0.0  ;;  %v222_v32 = vmax.f32 %v214_v24, 0.0  ;;  %v223_v33 = vmax.f32 %v215_v25, 0.0 }
  0x16   : > { %v224_v34 = vmax.f32 %v216_v26, 0.0  ;;  %v225_v35 = vmax.f32 %v217_v27, 0.0  ;;  %v226_v36 = vmax.f32 %v218_v28, 0.0  ;;  %v227_v37 = vmax.f32 %v219_v29, 0.0 }
  0x17   : > { %v372_v38 = vpack.c.bf16 %v221_v31, %v220_v30  ;;  %v377_v39 = vpack.c.bf16 %v223_v33, %v222_v32 }
  0x18   : > { %v382_v40 = vpack.c.bf16 %v225_v35, %v224_v34  ;;  %v387_v41 = vpack.c.bf16 %v227_v37, %v226_v36 }
  0x19   : > { %373 = vst [vmem:[%s172_s25] sm:$0xff] %v372_v38   ;;  %392 = vst [vmem:[%s172_s25 + $0x8] sm:$0xff] %v377_v39  }
  0x1a   : > { %393 = vst [vmem:[%s172_s25 + $0x10] sm:$0xff] %v382_v40   ;;  %394 = vst [vmem:[%s172_s25 + $0x18] sm:$0xff] %v387_v41  }
  0x1b PF: > { %s13_s12 = sadd.s32 1, %s409_s12  }
  0x1c   : > { %p10_p4 = scmp.ge.s32.totalorder %s13_s12, 4  }
  0x1e   :  { %12 = sbr.rel (!%p10_p4) target bundleno = 1 (0x1), region = 62 }

// kernel: _lambda_.9
= control target key start
LH: loop header
LB: loop body
LE: loop exit
PB: predicated region body
PF: predicated region fallthrough
CT: control target
= control target key end

     0   :  { %s423_s12 = smov 0   ;;  %s449_s0 = inlined_call_operand.vmem [shape: bf16[128,128], index: 0, kind: input, shape index: {}]   ;;  %s450_s1 = inlined_call_operand.vmem [shape: f32[1,128], index: 1, kind: input, shape index: {}]   ;;  %s451_s2 = inlined_call_operand.vmem [shape: f32[1,128], index: 2, kind: input, shape index: {}]   ;;  %s452_s3 = inlined_call_operand.vmem [shape: bf16[128,128], index: 3, kind: output, shape index: {}]  }
   0x1 LB: > { %s316_s13 = sadd.s32 4294967295, %s401_s12   ;;  %p320_p0 = scmp.ge.s32.totalorder %s401_s12, 1  ;;  %s401_s12 = sphi %s423_s12, %s13_s12  }
   0x2   : > { %p138_p1 = scmp.lt.s32.totalorder %s401_s12, 3 }
   0x4   : > { %p139_p2 = pnand %p320_p0, %p138_p1 }
   0x5   : > { %s321_s14 = sshll.u32 (!%p139_p2), %s316_s13, 3 }
   0x6   : > { %142 = sbr.rel (%p139_p2) target bundleno = 25 (0x19), region = 32  ;;  %p163_p3 = scmp.lt.s32.totalorder (!%p139_p2), %s321_s14, 15 }
   0xb   : > { %s454_s14 = smov (!%p163_p3, %s321_s14), 15  ;;  %v325_v0 = vld [vmem:[%s450_s1] ss:$0 sm:$0xff] }
   0xc   : > { %s322_s15 = sshll.u32 %s454_s14, 2  ;;  %v326_v9 = vld [vmem:[%s451_s2] ss:$0 sm:$0xff] }
   0xd   : > { %s166_s18 = scalar_lea.vmem %s449_s0, %s322_s15  ;;  %s172_s25 = scalar_lea.vmem %s452_s3, %s322_s15 }
   0xe   : > { %v346_v1 = vld [vmem:[%s166_s18] sm:$0xff]   ;;  %v381_v2 = vld [vmem:[%s166_s18 + $0x8] sm:$0xff]   ;;  %v382_v3 = vld [vmem:[%s166_s18 + $0x10] sm:$0xff]  }
   0xf   : > { %v347_v4 = vunpack.c.l.bf16 %v346_v1  ;;  %v348_v5 = vunpack.c.h.bf16 %v346_v1  ;;  %v351_v6 = vunpack.c.l.bf16 %v381_v2  ;;  %v352_v7 = vunpack.c.h.bf16 %v381_v2  ;;  %v383_v8 = vld [vmem:[%s166_s18 + $0x18] sm:$0xff]  }
  0x10   : > { %v355_v10 = vunpack.c.l.bf16 %v382_v3  ;;  %v356_v11 = vunpack.c.h.bf16 %v382_v3  ;;  %v359_v12 = vunpack.c.l.bf16 %v383_v8  ;;  %v360_v13 = vunpack.c.h.bf16 %v383_v8 }
  0x11   : > { %v197_v14 = vmul.f32 %v347_v4, %v325_v0  ;;  %v198_v15 = vmul.f32 %v348_v5, %v325_v0  ;;  %v199_v16 = vmul.f32 %v351_v6, %v325_v0  ;;  %v200_v17 = vmul.f32 %v352_v7, %v325_v0 }
  0x12   : > { %v201_v18 = vmul.f32 %v355_v10, %v325_v0  ;;  %v202_v19 = vmul.f32 %v356_v11, %v325_v0  ;;  %v203_v20 = vmul.f32 %v359_v12, %v325_v0  ;;  %v204_v21 = vmul.f32 %v360_v13, %v325_v0 }
  0x13   : > { %v212_v22 = vadd.f32 %v326_v9, %v197_v14  ;;  %v213_v23 = vadd.f32 %v326_v9, %v198_v15  ;;  %v214_v24 = vadd.f32 %v326_v9, %v199_v16  ;;  %v215_v25 = vadd.f32 %v326_v9, %v200_v17 }
  0x14   : > { %v216_v26 = vadd.f32 %v326_v9, %v201_v18  ;;  %v217_v27 = vadd.f32 %v326_v9, %v202_v19  ;;  %v218_v28 = vadd.f32 %v326_v9, %v203_v20  ;;  %v219_v29 = vadd.f32 %v326_v9, %v204_v21 }
  0x15   : > { %v364_v30 = vpack.c.bf16 %v213_v23, %v212_v22  ;;  %v369_v31 = vpack.c.bf16 %v215_v25, %v214_v24 }
  0x16   : > { %v374_v32 = vpack.c.bf16 %v217_v27, %v216_v26  ;;  %v379_v33 = vpack.c.bf16 %v219_v29, %v218_v28 }
  0x17   : > { %365 = vst [vmem:[%s172_s25] sm:$0xff] %v364_v30   ;;  %384 = vst [vmem:[%s172_s25 + $0x8] sm:$0xff] %v369_v31  }
  0x18   : > { %385 = vst [vmem:[%s172_s25 + $0x10] sm:$0xff] %v374_v32   ;;  %386 = vst [vmem:[%s172_s25 + $0x18] sm:$0xff] %v379_v33  }
  0x19 PF: > { %s13_s12 = sadd.s32 1, %s401_s12  }
  0x1a   : > { %p10_p4 = scmp.ge.s32.totalorder %s13_s12, 4  }
  0x1c   :  { %12 = sbr.rel (!%p10_p4) target bundleno = 1 (0x1), region = 62 }

// kernel: _lambda_.11
= control target key start
LH: loop header
LB: loop body
LE: loop exit
PB: predicated region body
PF: predicated region fallthrough
CT: control target
= control target key end

     0   :  { %s471_s15 = smov 0   ;;  %s501_s0 = inlined_call_operand.vmem [shape: bf16[128,128], index: 0, kind: input, shape index: {}]   ;;  %s502_s1 = inlined_call_operand.vmem [shape: f32[1,128], index: 1, kind: input, shape index: {}]   ;;  %s503_s2 = inlined_call_operand.vmem [shape: f32[1,128], index: 2, kind: input, shape index: {}]   ;;  %s504_s3 = inlined_call_operand.vmem [shape: bf16[128,128], index: 3, kind: input, shape index: {}]   ;;  %s505_s4 = inlined_call_operand.vmem [shape: f32[128,128], index: 4, kind: output, shape index: {}]  }
   0x1 LB: > { %s377_s16 = sadd.s32 4294967295, %s444_s15   ;;  %p381_p0 = scmp.ge.s32.totalorder %s444_s15, 1  ;;  %s444_s15 = sphi %s471_s15, %s14_s15  }
   0x2   : > { %p174_p1 = scmp.lt.s32.totalorder %s444_s15, 3 }
   0x4   : > { %p175_p2 = pnand %p381_p0, %p174_p1 }
   0x5   : > { %s382_s17 = sshll.u32 (!%p175_p2), %s377_s16, 3 }
   0x6   : > { %178 = sbr.rel (%p175_p2) target bundleno = 33 (0x21), region = 36  ;;  %p206_p3 = scmp.lt.s32.totalorder (!%p175_p2), %s382_s17, 15 }
   0xb   : > { %s507_s17 = smov (!%p206_p3, %s382_s17), 15  ;;  %v388_v0 = vld [vmem:[%s502_s1] ss:$0 sm:$0xff] }
   0xc   : > { %s383_s18 = sshll.u32 %s507_s17, 2  ;;  %v389_v11 = vld [vmem:[%s503_s2] ss:$0 sm:$0xff]  ;;  %s387_s29 = sshll.u32 %s507_s17, 3 }
   0xd   : > { %s209_s21 = scalar_lea.vmem %s501_s0, %s383_s18  ;;  %s215_s24 = scalar_lea.vmem %s504_s3, %s383_s18 }
   0xe   : > { %v393_v1 = vld [vmem:[%s209_s21] sm:$0xff]   ;;  %v424_v3 = vld [vmem:[%s209_s21 + $0x8] sm:$0xff]   ;;  %v425_v9 = vld [vmem:[%s209_s21 + $0x10] sm:$0xff]   ;;  %s221_s6 = scalar_lea.vmem %s505_s4, %s387_s29 }
   0xf   : > { %v409_v2 = vld [vmem:[%s215_s24] sm:$0xff]   ;;  %v394_v4 = vunpack.c.l.bf16 %v393_v1  ;;  %v395_v6 = vunpack.c.h.bf16 %v393_v1  ;;  %v427_v8 = vld [vmem:[%s215_s24 + $0x8] sm:$0xff]   ;;  %v428_v10 = vld [vmem:[%s215_s24 + $0x10] sm:$0xff]   ;;  %v398_v12 = vunpack.c.l.bf16 %v424_v3  ;;  %v399_v14 = vunpack.c.h.bf16 %v424_v3 }
  0x10   : > { %v410_v5 = vunpack.c.l.bf16 %v409_v2  ;;  %v411_v7 = vunpack.c.h.bf16 %v409_v2  ;;  %v414_v13 = vunpack.c.l.bf16 %v427_v8  ;;  %v415_v15 = vunpack.c.h.bf16 %v427_v8  ;;  %v426_v16 = vld [vmem:[%s209_s21 + $0x18] sm:$0xff]  }
  0x11   : > { %v246_v17 = vmul.f32 %v394_v4, %v388_v0  ;;  %v247_v18 = vmul.f32 %v395_v6, %v388_v0  ;;  %v402_v19 = vunpack.c.l.bf16 %v425_v9  ;;  %v418_v20 = vunpack.c.l.bf16 %v428_v10  ;;  %v429_v21 = vld [vmem:[%s215_s24 + $0x18] sm:$0xff]  }
  0x12   : > { %v248_v22 = vmul.f32 %v398_v12, %v388_v0  ;;  %v249_v23 = vmul.f32 %v399_v14, %v388_v0  ;;  %v403_v24 = vunpack.c.h.bf16 %v425_v9  ;;  %v419_v25 = vunpack.c.h.bf16 %v428_v10 }
  0x13   : > { %v261_v26 = vadd.f32 %v389_v11, %v246_v17  ;;  %v262_v27 = vadd.f32 %v389_v11, %v247_v18  ;;  %v250_v28 = vmul.f32 %v402_v19, %v388_v0  ;;  %v406_v29 = vunpack.c.l.bf16 %v426_v16 }
  0x14   : > { %v263_v30 = vadd.f32 %v389_v11, %v248_v22  ;;  %v264_v31 = vadd.f32 %v389_v11, %v249_v23  ;;  %v251_v32 = vmul.f32 %v403_v24, %v388_v0  ;;  %v422_v33 = vunpack.c.l.bf16 %v429_v21 }
  0x15   : > { %v285_v34 = vadd.f32 %v410_v5, %v261_v26  ;;  %v286_v35 = vadd.f32 %v411_v7, %v262_v27  ;;  %v265_v36 = vadd.f32 %v389_v11, %v250_v28  ;;  %v252_v37 = vmul.f32 %v406_v29, %v388_v0 }
  0x16   : > { %v287_v38 = vadd.f32 %v414_v13, %v263_v30  ;;  %v288_v39 = vadd.f32 %v415_v15, %v264_v31  ;;  %v266_v40 = vadd.f32 %v389_v11, %v251_v32  ;;  %v407_v41 = vunpack.c.h.bf16 %v426_v16 }
  0x17   : > { %v293_v42 = vmax.f32 %v285_v34, 0.0  ;;  %v294_v43 = vmax.f32 %v286_v35, 0.0  ;;  %v289_v44 = vadd.f32 %v418_v20, %v265_v36  ;;  %v267_v45 = vadd.f32 %v389_v11, %v252_v37 }
  0x18   : > { %v295_v46 = vmax.f32 %v287_v38, 0.0  ;;  %v296_v47 = vmax.f32 %v288_v39, 0.0  ;;  %v290_v48 = vadd.f32 %v419_v25, %v266_v40  ;;  %v253_v49 = vmul.f32 %v407_v41, %v388_v0 }
  0x19   : > { %301 = vst [vmem:[%s221_s6] sm:$0xff] %v293_v42  ;;  %302 = vst [vmem:[%s221_s6 + $0x8] sm:$0xff] %v294_v43  ;;  %v297_v50 = vmax.f32 %v289_v44, 0.0  ;;  %v291_v51 = vadd.f32 %v422_v33, %v267_v45  ;;  %v423_v52 = vunpack.c.h.bf16 %v429_v21 }
  0x1a   : > { %303 = vst [vmem:[%s221_s6 + $0x10] sm:$0xff] %v295_v46  ;;  %304 = vst [vmem:[%s221_s6 + $0x18] sm:$0xff] %v296_v47  ;;  %v298_v53 = vmax.f32 %v290_v48, 0.0  ;;  %v268_v54 = vadd.f32 %v389_v11, %v253_v49 }
  0x1b   : > { %305 = vst [vmem:[%s221_s6 + $0x20] sm:$0xff] %v297_v50  ;;  %v299_v55 = vmax.f32 %v291_v51, 0.0 }
  0x1c   : > { %306 = vst [vmem:[%s221_s6 + $0x28] sm:$0xff] %v298_v53  ;;  %v292_v56 = vadd.f32 %v423_v52, %v268_v54 }
  0x1d   : > { %307 = vst [vmem:[%s221_s6 + $0x30] sm:$0xff] %v299_v55 }
  0x1e   : > { %v300_v57 = vmax.f32 %v292_v56, 0.0 }
  0x20   : > { %308 = vst [vmem:[%s221_s6 + $0x38] sm:$0xff] %v300_v57 }
  0x21 PF: > { %s14_s15 = sadd.s32 1, %s444_s15  }
  0x22   : > { %p11_p4 = scmp.ge.s32.totalorder %s14_s15, 4  }
  0x24   :  { %13 = sbr.rel (!%p11_p4) target bundleno = 1 (0x1), region = 69 }

</bundles_post_ra>
